<compile_context>
chip_gen: v6e
topology: v6e:2x2x1
jax: 0.10.0
libtpu: 0.0.40
codegen_flags: <defaults>
</compile_context>

<pallas_src>
import jax
import jax.numpy as jnp
from jax.experimental import pallas as pl
from jax.experimental.pallas import tpu as pltpu


def conv1x1_stats_kernel(x_ref, w_ref, stats_ref):
    """Per M-tile: y = x @ W (bf16 MXU, f32 accum); emit per-tile per-channel sum / sumsq.

    Per-tile partial stats (instead of a resident accumulator) keep the grid axis fully
    parallel, so v7x's two TensorCores can split the pass.
    """
    y = jnp.dot(x_ref[...], w_ref[...], preferred_element_type=jnp.float32)
    s = jnp.sum(y, axis=0, keepdims=True)          # (1, C_out) f32
    sq = jnp.sum(y * y, axis=0, keepdims=True)     # (1, C_out) f32
    stats_ref[...] = jnp.concatenate([s, sq], axis=0)[None]   # (1, 2, C_out)


def conv1x1_bn_relu_kernel(x_ref, w_ref, ss_ref, o_ref):
    """Per M-tile: recompute y = x @ W, then fused BN affine (precomputed scale/shift) + ReLU.

    Recomputing the small matmul avoids writing + re-reading the (M, C_out) intermediate to HBM
    (the kernel is memory-bound, nowhere near MXU-bound).  Elementwise math stays f32.
    """
    y = jnp.dot(x_ref[...], w_ref[...], preferred_element_type=jnp.float32)
    scale = ss_ref[0:1, :]
    shift = ss_ref[1:2, :]
    o_ref[...] = jnp.maximum(y * scale + shift, 0.0)


def _pick_tm(M, tm_target):
    """Largest sublane-aligned tile <= tm_target that divides M."""
    assert M % 8 == 0, "M = N*H*W must be a multiple of 8"
    tm = min(tm_target, M)
    tm -= tm % 8
    tm = max(tm, 8)
    while M % tm != 0:
        tm -= 8
    return tm


def embed_forward(x_nchw, weight, bias, gamma, beta, eps=1e-5, tm=1024):
    del bias  # pre-BN per-channel bias is cancelled by training-mode BatchNorm (shift-invariance)
    N, C_in, H, W = x_nchw.shape
    C_out = weight.shape[0]
    M = N * H * W
    tm = _pick_tm(M, tm)
    num_tiles = M // tm
    grid = (num_tiles,)

    # Layout glue (kept in the wrapper for NCHW module parity).
    x2d = jnp.transpose(x_nchw, (0, 2, 3, 1)).reshape(M, C_in).astype(jnp.bfloat16)
    wt = jnp.transpose(weight.reshape(C_out, C_in)).astype(jnp.bfloat16)   # (C_in, C_out)

    vmem_limit = 32 * 1024 * 1024  # generous headroom; safe on v5e/v6e/v7x scoped VMEM

    # Pass 1: per-tile channel sum / sum-of-squares of the (bias-free) 1x1 conv output.
    stats = pl.pallas_call(
        conv1x1_stats_kernel,
        out_shape=jax.ShapeDtypeStruct((num_tiles, 2, C_out), jnp.float32),
        grid_spec=pltpu.PrefetchScalarGridSpec(
            num_scalar_prefetch=0,
            grid=grid,
            in_specs=[pl.BlockSpec((tm, C_in), lambda i: (i, 0)),
                      pl.BlockSpec((C_in, C_out), lambda i: (0, 0))],
            out_specs=pl.BlockSpec((1, 2, C_out), lambda i: (i, 0, 0))),
        compiler_params=pltpu.CompilerParams(
            dimension_semantics=("parallel",),
            vmem_limit_bytes=vmem_limit),
        cost_estimate=pl.CostEstimate(
            flops=2 * M * C_in * C_out + 3 * M * C_out,
            transcendentals=0,
            bytes_accessed=M * C_in * 2 + C_in * C_out * 2 + num_tiles * 2 * C_out * 4),
    )(x2d, wt)

    # Tiny glue: reduce per-tile partials, fold training-mode BN (biased variance over N*H*W,
    # like PyTorch) into a single packed (scale, shift) operand.
    total = jnp.sum(stats, axis=0)                 # (2, C_out) f32
    mean = total[0] / M
    var = total[1] / M - mean * mean               # TODO(synk): one-pass E[y^2]-E[y]^2; fine here
    scale = gamma.astype(jnp.float32) / jnp.sqrt(var + eps)
    shift = beta.astype(jnp.float32) - mean * scale
    ss = jnp.stack([scale, shift], axis=0)         # (2, C_out) f32

    # Pass 2: recompute the 1x1 conv and fuse BN affine + ReLU; write the final output directly.
    out2d = pl.pallas_call(
        conv1x1_bn_relu_kernel,
        out_shape=jax.ShapeDtypeStruct((M, C_out), jnp.float32),
        grid_spec=pltpu.PrefetchScalarGridSpec(
            num_scalar_prefetch=0,
            grid=grid,
            in_specs=[pl.BlockSpec((tm, C_in), lambda i: (i, 0)),
                      pl.BlockSpec((C_in, C_out), lambda i: (0, 0)),
                      pl.BlockSpec((2, C_out), lambda i: (0, 0))],
            out_specs=pl.BlockSpec((tm, C_out), lambda i: (i, 0))),
        compiler_params=pltpu.CompilerParams(
            dimension_semantics=("parallel",),
            vmem_limit_bytes=vmem_limit),
        cost_estimate=pl.CostEstimate(
            flops=2 * M * C_in * C_out + 3 * M * C_out,
            transcendentals=0,
            bytes_accessed=M * C_in * 2 + C_in * C_out * 2 + 2 * C_out * 4 + M * C_out * 4),
    )(x2d, wt, ss)

    # Back to NCHW like the PyTorch module.
    return jnp.transpose(out2d.reshape(N, H, W, C_out), (0, 3, 1, 2))


def embed_reference(x_nchw, weight, bias, gamma, beta, eps=1e-5):
    """Pure-JAX f32 reference of the same forward (for correctness check)."""
    N, C_in, H, W = x_nchw.shape
    C_out = weight.shape[0]
    x2d = jnp.transpose(x_nchw, (0, 2, 3, 1)).reshape(-1, C_in).astype(jnp.float32)
    y = x2d @ weight.reshape(C_out, C_in).T.astype(jnp.float32) + bias
    mean = jnp.mean(y, axis=0)
    var = jnp.mean((y - mean) ** 2, axis=0)
    y = (y - mean) / jnp.sqrt(var + eps) * gamma + beta
    y = jnp.maximum(y, 0.0)
    return jnp.transpose(y.reshape(N, H, W, C_out), (0, 3, 1, 2))


if __name__ == "__main__":
    # Small shapes consistent with Embed(dim_in, dim_out, convs=False); M = N*H*W = 2048 so the
    # grid has >1 tile and the per-tile stats reduction path is exercised.
    N, C_in, H, W = 2, 64, 32, 32
    C_out = 128

    key = jax.random.PRNGKey(0)
    kx, kw, kb = jax.random.split(key, 3)

    x = jax.random.normal(kx, (N, C_in, H, W), dtype=jnp.float32)
    # Conv2d(dim_in, dim_out, kernel_size=1) weight/bias (deterministic synthetic init).
    weight = jax.random.normal(kw, (C_out, C_in, 1, 1), dtype=jnp.float32) * 0.05
    bias = jax.random.normal(kb, (C_out,), dtype=jnp.float32) * 0.05
    # BatchNorm2d(dim_out) default parameters.
    gamma = jnp.ones((C_out,), dtype=jnp.float32)
    beta = jnp.zeros((C_out,), dtype=jnp.float32)

    out = embed_forward(x, weight, bias, gamma, beta)
    out = jax.block_until_ready(out)

    ref = embed_reference(x, weight, bias, gamma, beta)
    assert out.shape == (N, C_out, H, W)
    # bf16 matmul inputs (f32 accumulation + f32 BN math) -> slightly looser tolerance vs f32 ref.
    assert jnp.allclose(out, ref, atol=3e-2, rtol=3e-2), "mismatch vs reference"

    print("KERNEL_OK")
</pallas_src>

<mosaic_0001>
module attributes {stable_mosaic.version = 11 : i64} {
  func.func @conv1x1_stats_kernel(%arg0: i32, %arg1: memref<1024x64xbf16, #tpu.memory_space<vmem>>, %arg2: memref<64x128xbf16, #tpu.memory_space<vmem>>, %arg3: memref<1x2x128xf32, #tpu.memory_space<vmem>>) attributes {dimension_semantics = [#tpu.dimension_semantics<parallel>], iteration_bounds = array<i64: 2>, scalar_prefetch = 0 : i64, scratch_operands = 0 : i64, tpu.core_type = #tpu.core_type<tc>, window_params = [{transform_indices = @transform_0, window_bounds = array<i64: 1024, 64>}, {pipeline_mode = #tpu.pipeline_mode<synchronous>, transform_indices = @transform_1, window_bounds = array<i64: 64, 128>}, {transform_indices = @transform_2, window_bounds = array<i64: 1, 2, 128>}]} {
    %c0 = arith.constant 0 : index
    %c0_0 = arith.constant 0 : index
    %0 = vector.load %arg1[%c0, %c0_0] : memref<1024x64xbf16, #tpu.memory_space<vmem>>, vector<1024x64xbf16>
    %c0_1 = arith.constant 0 : index
    %c0_2 = arith.constant 0 : index
    %1 = vector.load %arg2[%c0_1, %c0_2] : memref<64x128xbf16, #tpu.memory_space<vmem>>, vector<64x128xbf16>
    %cst = arith.constant dense<0.000000e+00> : vector<1024x128xf32>
    %2 = tpu.matmul %0, %1, %cst {dimension_numbers = #tpu.dot_dimension_numbers<[1], [0], [0], [1], [0, 0, 1, 1], [], []>} : vector<1024x64xbf16>, vector<64x128xbf16>, vector<1024x128xf32> -> vector<1024x128xf32>
    %cst_3 = arith.constant dense<0.000000e+00> : vector<128xf32>
    %3 = vector.multi_reduction <add>, %2, %cst_3 [0] : vector<1024x128xf32> to vector<128xf32>
    %4 = vector.shape_cast %3 : vector<128xf32> to vector<1x128xf32>
    %5 = arith.mulf %2, %2 : vector<1024x128xf32>
    %cst_4 = arith.constant dense<0.000000e+00> : vector<128xf32>
    %6 = vector.multi_reduction <add>, %5, %cst_4 [0] : vector<1024x128xf32> to vector<128xf32>
    %7 = vector.shape_cast %6 : vector<128xf32> to vector<1x128xf32>
    %8 = tpu.concatenate %4, %7 in 0 : vector<1x128xf32>, vector<1x128xf32> -> vector<2x128xf32>
    %9 = vector.shape_cast %8 : vector<2x128xf32> to vector<1x2x128xf32>
    %c0_5 = arith.constant 0 : index
    %c0_6 = arith.constant 0 : index
    %c0_7 = arith.constant 0 : index
    %10 = vector.load %arg3[%c0_5, %c0_6, %c0_7] : memref<1x2x128xf32, #tpu.memory_space<vmem>>, vector<1x2x128xf32>
    tpu.vector_store %arg3[%c0_5, %c0_6, %c0_7], %9 {strides = array<i32>} : memref<1x2x128xf32, #tpu.memory_space<vmem>>, vector<1x2x128xf32>,
    return
  }
  func.func @transform_0(%arg0: i32) -> (i32, i32) {
    %c0_i32 = arith.constant 0 : i32
    %c0_i32_0 = arith.constant 0 : i32
    return %arg0, %c0_i32 : i32, i32
  }
  func.func @transform_1(%arg0: i32) -> (i32, i32) {
    %c0_i32 = arith.constant 0 : i32
    %c0_i32_0 = arith.constant 0 : i32
    %c0_i32_1 = arith.constant 0 : i32
    return %c0_i32, %c0_i32_0 : i32, i32
  }
  func.func @transform_2(%arg0: i32) -> (i32, i32, i32) {
    %c0_i32 = arith.constant 0 : i32
    %c0_i32_0 = arith.constant 0 : i32
    %c0_i32_1 = arith.constant 0 : i32
    return %arg0, %c0_i32, %c0_i32_0 : i32, i32, i32
  }
}

</mosaic_0001>

<bundles_post_ra>
// kernel: tpu_custom_call.1
= control target key start
LH: loop header
LB: loop body
LE: loop exit
PB: predicated region body
PF: predicated region fallthrough
CT: control target
= control target key end

     0   :  { %7 = vsyncpa [#allocation3], 0  ;;  %s2847_s0 = inlined_call_operand.vmem [shape: bf16[2048,64], index: 0, kind: input, shape index: {}]   ;;  %s2848_s1 = inlined_call_operand.vmem [shape: bf16[64,128], index: 1, kind: input, shape index: {}]   ;;  %s2849_s2 = inlined_call_operand.hbm [shape: f32[2,2,128], index: 2, kind: output, shape index: {}]  }
   0x1   :  { %9 = vsyncpa [#allocation3 + $0x1], 0  ;;  %s2373_s9 = smov 0   ;;  %s2375_s10 = smov 0  }
   0x2   :  { %s2377_s11 = smov 0   ;;  %s2379_s12 = smov 0  }
   0x3 LB: > { %s2394_s13 = sadd.s32 4294967295, %s2355_s12   ;;  %s1833_s14 = sadd.s32 4294967294, %s2355_s12   ;;  %s2355_s12 = sphi %s2379_s12, %s2855_s12   ;;  %s2351_s11 = sphi %s2377_s11, %s2854_s11   ;;  %s2347_s10 = sphi %s2375_s10, %s2853_s10   ;;  %s2343_s9 = sphi %s2373_s9, %s2852_s9  }
   0x4   : > { %s2398_s15 = sadd.s32 1, %s2355_s12   ;;  %s69_s16 = sadd.s32 1, %s2351_s11 }
   0x5   : > { %s66_s17 = ssub.s32 %s2355_s12, %s2398_s15  ;;  %p79_p0 = scmp.ne.s32.totalorder %s2351_s11, %s2347_s10 }
   0x6   : > { %p67_p1 = scmp.eq.s32.totalorder %s66_s17, 0  ;;  %p80_p2 = scmp.eq.s32.totalorder %s2394_s13, 1 }
   0x7   : > { %p85_p3 = scmp.ne.s32.totalorder %s2347_s10, %s2343_s9  ;;  %p86_p4 = scmp.eq.s32.totalorder %s1833_s14, 1 }
   0x8   : > { %s2409_s18 = scalar_select %p67_p1, %s2351_s11, %s69_s16  }
   0x9   : > { %p2411_p5 = por %p80_p2, %p79_p0  ;;  %p2415_p6 = por %p86_p4, %p85_p3 }
   0xa   : > { %p1836_p7 = scmp.ge.s32.totalorder %s2355_s12, 1  ;;  %p116_p8 = scmp.lt.s32.totalorder %s2355_s12, 3 }
   0xc   : > { %p117_p9 = pnand %p1836_p7, %p116_p8 }
   0xd   : > { %s1838_s23 = sshll.u32 (!%p117_p9), %s2394_s13, 7  ;;  %s135_s6 = sand.u32 (!%p117_p9), 1, %s2347_s10  }
   0xe   : > { %120 = sbr.rel (%p117_p9) target bundleno = 517 (0x205), region = 28  ;;  %p139_p10 = scmp.lt.s32.totalorder (!%p117_p9), %s1838_s23, 255 }
   0xf   : > { %s1837_s7 = sshll.u32 (!%p117_p9), %s135_s6, 1  ;;  %s1973_s8 = sshll.u32 (!%p117_p9), %s2394_s13, 5 }
  0x10   : > { %s137_s14 = scalar_lea.vmem (!%p117_p9), [#allocation2], %s1837_s7  ;;  %s2812_s22 = scalar_lea.hbm (!%p117_p9), %s2849_s2, %s1973_s8 }
  0x11   : > { %s1774_s16 = sshll.u32 (!%p117_p9), %s137_s14, 4  ;;  %s2357_s13 = smov (!%p117_p9), [#allocation2]   ;;  %s1775_s16 = int_to_ptr.vmem [resolvable:$true] %s1774_s16 }
  0x12   : > { %s2295_s24 = scalar_lea.vmem (!%p117_p9), %s1775_s16, 32  ;;  %s2299_s25 = sshll.u32 (!%p117_p9), %s2357_s13, 4  ;;  %s2300_s25 = int_to_ptr.vmem [resolvable:$false] %s2299_s25 }
  0x13   : > { %v2227_v0 = vld [vmem:[%s2848_s1 + $0x18] sm:$0xff]   ;;  %v2228_v1 = vld [vmem:[%s2848_s1 + $0x10] sm:$0xff]   ;;  %s2857_s23 = smov (!%p139_p10, %s1838_s23), 255  ;;  %v2229_v2 = vld [vmem:[%s2848_s1 + $0x8] sm:$0xff]   ;;  %vm625_vm0 = vcmask 523264   ;;  %vm1757_vm1 = vcmask 1040384   ;;  %p2296_p11 = scmp.ne.s32.totalorder %s1775_s16, %s2295_s24 }
  0x14   : > { %2044 = vmatprep.subr.bf16.mxu0 %v2227_v0  ;;  %2180 = vmatprep.subr.bf16.mxu1 %v2227_v0  ;;  %s1839_s28 = sshll.u32 %s2857_s23, 2  ;;  %v2230_v4 = vld [vmem:[%s2848_s1] sm:$0xff]   ;;  %s1761_s23 = scalar_lea.sflag [#allocation3], %s135_s6 }
  0x15   : > { %2045 = vmatpush3.bf16.msra.mxu0 %v2227_v0  ;;  %2184 = vmatpush3.bf16.msra.mxu1 %v2227_v0  ;;  %s2434_s3 = scalar_lea.vmem %s2847_s0, %s1839_s28  ;;  %p2297_p12 = pnand %p2296_p11, %p2411_p5 }
  0x16   : > { %2046 = vmatprep.subr.bf16.mxu0 %v2228_v1  ;;  %2181 = vmatprep.subr.bf16.mxu1 %v2228_v1  ;;  %v2231_v3 = vld [vmem:[%s2434_s3] sm:$0xff]   ;;  %v2232_v5 = vld [vmem:[%s2434_s3 + $0x8] sm:$0xff]   ;;  %v2233_v6 = vld [vmem:[%s2434_s3 + $0x10] sm:$0xff]   ;;  %s2301_s26 = scalar_lea.vmem %s2300_s25, 64  ;;  %p2302_p0 = scmp.lt.s32.totalorder %s1775_s16, %s2300_s25 }
  0x17   : > { %2052 = vmatprep.mubr.msk.bf16.mxu0 %vm625_vm0, %v2231_v3  ;;  %v2234_v7 = vld [vmem:[%s2434_s3 + $0x18] sm:$0xff]   ;;  %v2235_v8 = vld [vmem:[%s2434_s3 + $0x20] sm:$0xff]   ;;  %v2236_v9 = vld [vmem:[%s2434_s3 + $0x28] sm:$0xff]   ;;  %p2298_p13 = pneg %p2297_p12  ;;  %p2303_p1 = scmp.lt.s32.totalorder %s2301_s26, %s2295_s24 }
  0x18   : > { %v2237_v10 = vld [vmem:[%s2434_s3 + $0x30] sm:$0xff]   ;;  %v2238_v11 = vld [vmem:[%s2434_s3 + $0x38] sm:$0xff]   ;;  %v2239_v12 = vld [vmem:[%s2434_s3 + $0x40] sm:$0xff]  }
  0x19   : > { %2047 = vmatpush3.bf16.msra.mxu0 %v2228_v1  ;;  %2185 = vmatpush3.bf16.msra.mxu1 %v2228_v1  ;;  %v2263_v13 = vld [vmem:[%s2434_s3 + $0x100] sm:$0xff]   ;;  %v2264_v14 = vld [vmem:[%s2434_s3 + $0x108] sm:$0xff]   ;;  %v2265_v15 = vld [vmem:[%s2434_s3 + $0x110] sm:$0xff]   ;;  %p2304_p2 = por %p2303_p1, %p2302_p0 }
  0x1a   : > { %2048 = vmatprep.subr.bf16.mxu0 %v2229_v2  ;;  %2182 = vmatprep.subr.bf16.mxu1 %v2229_v2  ;;  %v2240_v16 = vld [vmem:[%s2434_s3 + $0x48] sm:$0xff]   ;;  %v2241_v17 = vld [vmem:[%s2434_s3 + $0x50] sm:$0xff]   ;;  %v2266_v18 = vld [vmem:[%s2434_s3 + $0x118] sm:$0xff]  }
  0x1b   : > { %2116 = vmatprep.mubr.msk.bf16.mxu1 %vm625_vm0, %v2263_v13  ;;  %v2267_v19 = vld [vmem:[%s2434_s3 + $0x120] sm:$0xff]   ;;  %v2242_v20 = vld [vmem:[%s2434_s3 + $0x58] sm:$0xff]   ;;  %v2268_v22 = vld [vmem:[%s2434_s3 + $0x128] sm:$0xff]   ;;  %p2305_p3 = pnand %p2304_p2, %p2298_p13 }
  0x1c   : > { %v2243_v21 = vld [vmem:[%s2434_s3 + $0x60] sm:$0xff]   ;;  %v2269_v23 = vld [vmem:[%s2434_s3 + $0x130] sm:$0xff]   ;;  %v2244_v24 = vld [vmem:[%s2434_s3 + $0x68] sm:$0xff]  }
  0x1d   : > { %2049 = vmatpush3.bf16.msra.mxu0 %v2229_v2  ;;  %2186 = vmatpush3.bf16.msra.mxu1 %v2229_v2  ;;  %v2270_v25 = vld [vmem:[%s2434_s3 + $0x138] sm:$0xff]   ;;  %v2245_v26 = vld [vmem:[%s2434_s3 + $0x70] sm:$0xff]   ;;  %v2271_v27 = vld [vmem:[%s2434_s3 + $0x140] sm:$0xff]  }
  0x1e   : > { %2050 = vmatprep.subr.bf16.mxu0 %v2230_v4  ;;  %2183 = vmatprep.subr.bf16.mxu1 %v2230_v4  ;;  %v2246_v28 = vld [vmem:[%s2434_s3 + $0x78] sm:$0xff]   ;;  %v2272_v29 = vld [vmem:[%s2434_s3 + $0x148] sm:$0xff]   ;;  %v2247_v30 = vld [vmem:[%s2434_s3 + $0x80] sm:$0xff]  }
  0x1f   : > { %v2273_v31 = vld [vmem:[%s2434_s3 + $0x150] sm:$0xff]   ;;  %v2248_v32 = vld [vmem:[%s2434_s3 + $0x88] sm:$0xff]   ;;  %v2274_v33 = vld [vmem:[%s2434_s3 + $0x158] sm:$0xff]  }
  0x20   : > { %v2249_v34 = vld [vmem:[%s2434_s3 + $0x90] sm:$0xff]   ;;  %v2275_v35 = vld [vmem:[%s2434_s3 + $0x160] sm:$0xff]   ;;  %v2250_v36 = vld [vmem:[%s2434_s3 + $0x98] sm:$0xff]  }
  0x21   : > { %2051 = vmatpush3.bf16.msra.mxu0 %v2230_v4  ;;  %2187 = vmatpush3.bf16.msra.mxu1 %v2230_v4  ;;  %v2276_v37 = vld [vmem:[%s2434_s3 + $0x168] sm:$0xff]   ;;  %v2251_v38 = vld [vmem:[%s2434_s3 + $0xa0] sm:$0xff]   ;;  %v2277_v39 = vld [vmem:[%s2434_s3 + $0x170] sm:$0xff]  }
  0x22   : > { %v2252_v40 = vld [vmem:[%s2434_s3 + $0xa8] sm:$0xff]   ;;  %v2278_v41 = vld [vmem:[%s2434_s3 + $0x178] sm:$0xff]   ;;  %v2253_v42 = vld [vmem:[%s2434_s3 + $0xb0] sm:$0xff]  }
  0x23   : > { %v2279_v43 = vld [vmem:[%s2434_s3 + $0x180] sm:$0xff]   ;;  %v2254_v44 = vld [vmem:[%s2434_s3 + $0xb8] sm:$0xff]   ;;  %v2280_v45 = vld [vmem:[%s2434_s3 + $0x188] sm:$0xff]  }
  0x24   : > { %2053 = vmatmul.mubr.msk.bf16.vlgmr.msra.gmra.mxu0 %vm625_vm0, %v2232_v5  ;;  %2117 = vmatmul.mubr.msk.bf16.vlgmr.msra.gmra.mxu1 %vm625_vm0, %v2264_v14  ;;  %v2255_v46 = vld [vmem:[%s2434_s3 + $0xc0] sm:$0xff]   ;;  %v2281_v47 = vld [vmem:[%s2434_s3 + $0x190] sm:$0xff]   ;;  %v2256_v48 = vld [vmem:[%s2434_s3 + $0xc8] sm:$0xff]  }
  0x25   : > { %2056 = vmatprep.mubr.msk.bf16.mxu0 %vm625_vm0, %v2233_v6  ;;  %2120 = vmatprep.mubr.msk.bf16.mxu1 %vm625_vm0, %v2265_v15  ;;  %v2282_v49 = vld [vmem:[%s2434_s3 + $0x198] sm:$0xff]   ;;  %v2257_v50 = vld [vmem:[%s2434_s3 + $0xd0] sm:$0xff]   ;;  %v2283_v51 = vld [vmem:[%s2434_s3 + $0x1a0] sm:$0xff]  }
  0x26   : > { %v2258_v52 = vld [vmem:[%s2434_s3 + $0xd8] sm:$0xff]   ;;  %v2284_v53 = vld [vmem:[%s2434_s3 + $0x1a8] sm:$0xff]   ;;  %v2259_v54 = vld [vmem:[%s2434_s3 + $0xe0] sm:$0xff]  }
  0x27   : > { %v2285_v55 = vld [vmem:[%s2434_s3 + $0x1b0] sm:$0xff]   ;;  %v2260_v56 = vld [vmem:[%s2434_s3 + $0xe8] sm:$0xff]   ;;  %v2286_v57 = vld [vmem:[%s2434_s3 + $0x1b8] sm:$0xff]  }
  0x28   : > { %v2261_v58 = vld [vmem:[%s2434_s3 + $0xf0] sm:$0xff]   ;;  %v2287_v59 = vld [vmem:[%s2434_s3 + $0x1c0] sm:$0xff]   ;;  %v2262_v60 = vld [vmem:[%s2434_s3 + $0xf8] sm:$0xff]  }
  0x29   : > { %v2288_v61 = vld [vmem:[%s2434_s3 + $0x1c8] sm:$0xff]   ;;  %v2289_v62 = vld [vmem:[%s2434_s3 + $0x1d0] sm:$0xff]   ;;  %v2290_v63 = vld [vmem:[%s2434_s3 + $0x1d8] sm:$0xff]  }
  0x2a   : > { %v2291_v0 = vld [vmem:[%s2434_s3 + $0x1e0] sm:$0xff]   ;;  %v2292_v1 = vld [vmem:[%s2434_s3 + $0x1e8] sm:$0xff]   ;;  %v2293_v2 = vld [vmem:[%s2434_s3 + $0x1f0] sm:$0xff]  }
  0x2b   : > { %v2294_v3 = vld [vmem:[%s2434_s3 + $0x1f8] sm:$0xff]  }
  0x2c   : > { %2057 = vmatmul.mubr.msk.bf16.gmra.mxu0 %vm625_vm0, %v2234_v7  ;;  %2121 = vmatmul.mubr.msk.bf16.gmra.mxu1 %vm625_vm0, %v2266_v18 }
  0x2d   : > { %2060 = vmatprep.mubr.msk.bf16.mxu0 %vm625_vm0, %v2235_v8  ;;  %2124 = vmatprep.mubr.msk.bf16.mxu1 %vm625_vm0, %v2267_v19 }
  0x34   : > { %2061 = vmatmul.mubr.msk.bf16.gmra.mxu0 %vm625_vm0, %v2236_v9  ;;  %2125 = vmatmul.mubr.msk.bf16.gmra.mxu1 %vm625_vm0, %v2268_v22 }
  0x35   : > { %2064 = vmatprep.mubr.msk.bf16.mxu0 %vm625_vm0, %v2237_v10  ;;  %2128 = vmatprep.mubr.msk.bf16.mxu1 %vm625_vm0, %v2269_v23 }
  0x3c   : > { %2065 = vmatmul.mubr.msk.bf16.gmra.mxu0 %vm625_vm0, %v2238_v11  ;;  %2129 = vmatmul.mubr.msk.bf16.gmra.mxu1 %vm625_vm0, %v2270_v25 }
  0x3d   : > { %2068 = vmatprep.mubr.msk.bf16.mxu0 %vm625_vm0, %v2239_v12  ;;  %2132 = vmatprep.mubr.msk.bf16.mxu1 %vm625_vm0, %v2271_v27 }
  0x44   : > { %2069 = vmatmul.mubr.msk.bf16.gmra.mxu0 %vm625_vm0, %v2240_v16  ;;  %2133 = vmatmul.mubr.msk.bf16.gmra.mxu1 %vm625_vm0, %v2272_v29 }
  0x45   : > { %2072 = vmatprep.mubr.msk.bf16.mxu0 %vm625_vm0, %v2241_v17  ;;  %2136 = vmatprep.mubr.msk.bf16.mxu1 %vm625_vm0, %v2273_v31 }
  0x4c   : > { %2073 = vmatmul.mubr.msk.bf16.gmra.mxu0 %vm625_vm0, %v2242_v20  ;;  %2137 = vmatmul.mubr.msk.bf16.gmra.mxu1 %vm625_vm0, %v2274_v33 }
  0x4d   : > { %2076 = vmatprep.mubr.msk.bf16.mxu0 %vm625_vm0, %v2243_v21  ;;  %2140 = vmatprep.mubr.msk.bf16.mxu1 %vm625_vm0, %v2275_v35 }
  0x54   : > { %2077 = vmatmul.mubr.msk.bf16.gmra.mxu0 %vm625_vm0, %v2244_v24  ;;  %2141 = vmatmul.mubr.msk.bf16.gmra.mxu1 %vm625_vm0, %v2276_v37 }
  0x55   : > { %2080 = vmatprep.mubr.msk.bf16.mxu0 %vm625_vm0, %v2245_v26  ;;  %2144 = vmatprep.mubr.msk.bf16.mxu1 %vm625_vm0, %v2277_v39 }
  0x5c   : > { %2081 = vmatmul.mubr.msk.bf16.gmra.mxu0 %vm625_vm0, %v2246_v28  ;;  %2145 = vmatmul.mubr.msk.bf16.gmra.mxu1 %vm625_vm0, %v2278_v41 }
  0x5d   : > { %2084 = vmatprep.mubr.msk.bf16.mxu0 %vm625_vm0, %v2247_v30  ;;  %2148 = vmatprep.mubr.msk.bf16.mxu1 %vm625_vm0, %v2279_v43 }
  0x64   : > { %2085 = vmatmul.mubr.msk.bf16.gmra.mxu0 %vm625_vm0, %v2248_v32  ;;  %2149 = vmatmul.mubr.msk.bf16.gmra.mxu1 %vm625_vm0, %v2280_v45 }
  0x65   : > { %2088 = vmatprep.mubr.msk.bf16.mxu0 %vm625_vm0, %v2249_v34  ;;  %2152 = vmatprep.mubr.msk.bf16.mxu1 %vm625_vm0, %v2281_v47 }
  0x6c   : > { %2089 = vmatmul.mubr.msk.bf16.gmra.mxu0 %vm625_vm0, %v2250_v36  ;;  %2153 = vmatmul.mubr.msk.bf16.gmra.mxu1 %vm625_vm0, %v2282_v49 }
  0x6d   : > { %2092 = vmatprep.mubr.msk.bf16.mxu0 %vm625_vm0, %v2251_v38  ;;  %2156 = vmatprep.mubr.msk.bf16.mxu1 %vm625_vm0, %v2283_v51 }
  0x74   : > { %2093 = vmatmul.mubr.msk.bf16.gmra.mxu0 %vm625_vm0, %v2252_v40  ;;  %2157 = vmatmul.mubr.msk.bf16.gmra.mxu1 %vm625_vm0, %v2284_v53 }
  0x75   : > { %2096 = vmatprep.mubr.msk.bf16.mxu0 %vm625_vm0, %v2253_v42  ;;  %2160 = vmatprep.mubr.msk.bf16.mxu1 %vm625_vm0, %v2285_v55 }
  0x7c   : > { %2097 = vmatmul.mubr.msk.bf16.gmra.mxu0 %vm625_vm0, %v2254_v44  ;;  %2161 = vmatmul.mubr.msk.bf16.gmra.mxu1 %vm625_vm0, %v2286_v57 }
  0x7d   : > { %2100 = vmatprep.mubr.msk.bf16.mxu0 %vm625_vm0, %v2255_v46  ;;  %2164 = vmatprep.mubr.msk.bf16.mxu1 %vm625_vm0, %v2287_v59 }
  0x84   : > { %2101 = vmatmul.mubr.msk.bf16.gmra.mxu0 %vm625_vm0, %v2256_v48  ;;  %2165 = vmatmul.mubr.msk.bf16.gmra.mxu1 %vm625_vm0, %v2288_v61 }
  0x85   : > { %2104 = vmatprep.mubr.msk.bf16.mxu0 %vm625_vm0, %v2257_v50  ;;  %2168 = vmatprep.mubr.msk.bf16.mxu1 %vm625_vm0, %v2289_v62 }
  0x8c   : > { %2105 = vmatmul.mubr.msk.bf16.gmra.mxu0 %vm625_vm0, %v2258_v52  ;;  %2169 = vmatmul.mubr.msk.bf16.gmra.mxu1 %vm625_vm0, %v2290_v63 }
  0x8d   : > { %2108 = vmatprep.mubr.msk.bf16.mxu0 %vm625_vm0, %v2259_v54  ;;  %2172 = vmatprep.mubr.msk.bf16.mxu1 %vm625_vm0, %v2291_v0 }
  0x94   : > { %2109 = vmatmul.mubr.msk.bf16.gmra.mxu0 %vm625_vm0, %v2260_v56  ;;  %2173 = vmatmul.mubr.msk.bf16.gmra.mxu1 %vm625_vm0, %v2292_v1 }
  0x95   : > { %2112 = vmatprep.mubr.msk.bf16.mxu0 %vm625_vm0, %v2261_v58  ;;  %2176 = vmatprep.mubr.msk.bf16.mxu1 %vm625_vm0, %v2293_v2 }
  0x9c   : > { %2113 = vmatmul.mubr.msk.bf16.gmra.mxu0 %vm625_vm0, %v2262_v60  ;;  %2177 = vmatmul.mubr.msk.bf16.gmra.mxu1 %vm625_vm0, %v2294_v3 }
  0xe4   : > { %v2054_v4 = vpop.f32.mrf.mxu0  ;;  %v2567_v44 = vpop.f32.mrf.mxu1 }
  0xe5   : > { %v1498_v12 = vmul.f32 %v2054_v4, %v2054_v4 }
  0xe6   : > { %v852_v5 = vpop.f32.mrf.mxu0  ;;  %v2569_v49 = vpop.f32.mrf.mxu1 }
  0xe7   : > { %v1496_v8 = vmul.f32 %v852_v5, %v852_v5 }
  0xe8   : > { %v2055_v6 = vpop.f32.mrf.mxu0  ;;  %v2571_v54 = vpop.f32.mrf.mxu1 }
  0xe9   : > { %v1499_v16 = vmul.f32 %v2055_v6, %v2055_v6 }
  0xea   : > { %v855_v7 = vpop.f32.mrf.mxu0  ;;  %v2573_v59 = vpop.f32.mrf.mxu1 }
  0xeb   : > { %v1363_v9 = vadd.f32 %v855_v7, %v852_v5  ;;  %v1497_v10 = vmul.f32 %v855_v7, %v855_v7 }
  0xec   : > { %v2058_v11 = vpop.f32.mrf.mxu0  ;;  %v2575_v0 = vpop.f32.mrf.mxu1 }
  0xed   : > { %v1364_v13 = vadd.f32 %v2054_v4, %v1363_v9  ;;  %v1624_v14 = vadd.f32 %v1497_v10, %v1496_v8  ;;  %v1502_v28 = vmul.f32 %v2058_v11, %v2058_v11 }
  0xee   : > { %v868_v15 = vpop.f32.mrf.mxu0  ;;  %v2577_v5 = vpop.f32.mrf.mxu1 }
  0xef   : > { %v1365_v17 = vadd.f32 %v2055_v6, %v1364_v13  ;;  %v1625_v18 = vadd.f32 %v1624_v14, %v1498_v12  ;;  %v1500_v22 = vmul.f32 %v868_v15, %v868_v15 }
  0xf0   : > { %v2059_v19 = vpop.f32.mrf.mxu0  ;;  %v2579_v10 = vpop.f32.mrf.mxu1 }
  0xf1   : > { %v1626_v20 = vadd.f32 %v1625_v18, %v1499_v16  ;;  %v1366_v21 = vadd.f32 %v1365_v17, %v868_v15  ;;  %v1503_v32 = vmul.f32 %v2059_v19, %v2059_v19 }
  0xf2   : > { %v871_v23 = vpop.f32.mrf.mxu0  ;;  %v2581_v15 = vpop.f32.mrf.mxu1 }
  0xf3   : > { %v1627_v24 = vadd.f32 %v1626_v20, %v1500_v22  ;;  %v1367_v25 = vadd.f32 %v1366_v21, %v871_v23  ;;  %v1501_v26 = vmul.f32 %v871_v23, %v871_v23 }
  0xf4   : > { %v2062_v27 = vpop.f32.mrf.mxu0  ;;  %v2583_v20 = vpop.f32.mrf.mxu1 }
  0xf5   : > { %v1368_v29 = vadd.f32 %v2058_v11, %v1367_v25  ;;  %v1628_v30 = vadd.f32 %v1627_v24, %v1501_v26  ;;  %v1506_v45 = vmul.f32 %v2062_v27, %v2062_v27 }
  0xf6   : > { %v884_v31 = vpop.f32.mrf.mxu0  ;;  %v2585_v25 = vpop.f32.mrf.mxu1 }
  0xf7   : > { %v1629_v33 = vadd.f32 %v1628_v30, %v1502_v28  ;;  %v1369_v34 = vadd.f32 %v2059_v19, %v1368_v29  ;;  %v1504_v37 = vmul.f32 %v884_v31, %v884_v31 }
  0xf8   : > { %v2063_v35 = vpop.f32.mrf.mxu0  ;;  %v2587_v30 = vpop.f32.mrf.mxu1 }
  0xf9   : > { %v1370_v36 = vadd.f32 %v1369_v34, %v884_v31  ;;  %v1630_v38 = vadd.f32 %v1629_v33, %v1503_v32  ;;  %v1507_v50 = vmul.f32 %v2063_v35, %v2063_v35 }
  0xfa   : > { %v887_v39 = vpop.f32.mrf.mxu0 }
  0xfb   : > { %v1631_v40 = vadd.f32 %v1630_v38, %v1504_v37  ;;  %v1371_v41 = vadd.f32 %v1370_v36, %v887_v39  ;;  %v1505_v42 = vmul.f32 %v887_v39, %v887_v39 }
  0xfc   : > { %v2066_v43 = vpop.f32.mrf.mxu0 }
  0xfd   : > { %v1372_v46 = vadd.f32 %v2062_v27, %v1371_v41  ;;  %v1632_v47 = vadd.f32 %v1631_v40, %v1505_v42  ;;  %v1510_v1 = vmul.f32 %v2066_v43, %v2066_v43 }
  0xfe   : > { %v900_v48 = vpop.f32.mrf.mxu0 }
  0xff   : > { %v1633_v51 = vadd.f32 %v1632_v47, %v1506_v45  ;;  %v1373_v52 = vadd.f32 %v2063_v35, %v1372_v46  ;;  %v1508_v56 = vmul.f32 %v900_v48, %v900_v48  ;;  %v2589_v35 = vpop.f32.mrf.mxu1 }
 0x100   : > { %v2067_v53 = vpop.f32.mrf.mxu0 }
 0x101   : > { %v1374_v55 = vadd.f32 %v1373_v52, %v900_v48  ;;  %v1634_v57 = vadd.f32 %v1633_v51, %v1507_v50  ;;  %v1511_v6 = vmul.f32 %v2067_v53, %v2067_v53  ;;  %v2591_v40 = vpop.f32.mrf.mxu1 }
 0x102   : > { %v903_v58 = vpop.f32.mrf.mxu0 }
 0x103   : > { %v1635_v60 = vadd.f32 %v1634_v57, %v1508_v56  ;;  %v1375_v61 = vadd.f32 %v1374_v55, %v903_v58  ;;  %v1509_v62 = vmul.f32 %v903_v58, %v903_v58  ;;  %v2593_v51 = vpop.f32.mrf.mxu1 }
 0x104   : > { %v2070_v63 = vpop.f32.mrf.mxu0 }
 0x105   : > { %v1376_v2 = vadd.f32 %v2066_v43, %v1375_v61  ;;  %v1636_v3 = vadd.f32 %v1635_v60, %v1509_v62  ;;  %v1514_v21 = vmul.f32 %v2070_v63, %v2070_v63  ;;  %v2595_v62 = vpop.f32.mrf.mxu1 }
 0x106   : > { %v916_v4 = vpop.f32.mrf.mxu0 }
 0x107   : > { %v1637_v7 = vadd.f32 %v1636_v3, %v1510_v1  ;;  %v1377_v8 = vadd.f32 %v2067_v53, %v1376_v2  ;;  %v1512_v12 = vmul.f32 %v916_v4, %v916_v4 }
 0x108   : > { %v2071_v9 = vpop.f32.mrf.mxu0 }
 0x109   : > { %v1378_v11 = vadd.f32 %v1377_v8, %v916_v4  ;;  %v1638_v13 = vadd.f32 %v1637_v7, %v1511_v6  ;;  %v1515_v26 = vmul.f32 %v2071_v9, %v2071_v9 }
 0x10a   : > { %v919_v14 = vpop.f32.mrf.mxu0 }
 0x10b   : > { %v1639_v16 = vadd.f32 %v1638_v13, %v1512_v12  ;;  %v1379_v17 = vadd.f32 %v1378_v11, %v919_v14  ;;  %v1513_v18 = vmul.f32 %v919_v14, %v919_v14 }
 0x10c   : > { %v2074_v19 = vpop.f32.mrf.mxu0 }
 0x10d   : > { %v1380_v22 = vadd.f32 %v2070_v63, %v1379_v17  ;;  %v1640_v23 = vadd.f32 %v1639_v16, %v1513_v18  ;;  %v1518_v41 = vmul.f32 %v2074_v19, %v2074_v19 }
 0x10e   : > { %v932_v24 = vpop.f32.mrf.mxu0 }
 0x10f   : > { %v1641_v27 = vadd.f32 %v1640_v23, %v1514_v21  ;;  %v1381_v28 = vadd.f32 %v2071_v9, %v1380_v22  ;;  %v1516_v32 = vmul.f32 %v932_v24, %v932_v24  ;;  %v2597_v9 = vpop.f32.mrf.mxu1 }
 0x110   : > { %v2075_v29 = vpop.f32.mrf.mxu0 }
 0x111   : > { %v1382_v31 = vadd.f32 %v1381_v28, %v932_v24  ;;  %v1642_v33 = vadd.f32 %v1641_v27, %v1515_v26  ;;  %v1519_v46 = vmul.f32 %v2075_v29, %v2075_v29  ;;  %v2599_v21 = vpop.f32.mrf.mxu1 }
 0x112   : > { %v935_v34 = vpop.f32.mrf.mxu0 }
 0x113   : > { %v1643_v36 = vadd.f32 %v1642_v33, %v1516_v32  ;;  %v1383_v37 = vadd.f32 %v1382_v31, %v935_v34  ;;  %v1517_v38 = vmul.f32 %v935_v34, %v935_v34  ;;  %v2601_v32 = vpop.f32.mrf.mxu1 }
 0x114   : > { %v2078_v39 = vpop.f32.mrf.mxu0 }
 0x115   : > { %v1384_v42 = vadd.f32 %v2074_v19, %v1383_v37  ;;  %v1644_v43 = vadd.f32 %v1643_v36, %v1517_v38  ;;  %v1522_v63 = vmul.f32 %v2078_v39, %v2078_v39 }
 0x116   : > { %v948_v45 = vpop.f32.mrf.mxu0 }
 0x117   : > { %v1645_v47 = vadd.f32 %v1644_v43, %v1518_v41  ;;  %v1385_v48 = vadd.f32 %v2075_v29, %v1384_v42  ;;  %v1520_v53 = vmul.f32 %v948_v45, %v948_v45  ;;  %v2603_v43 = vpop.f32.mrf.mxu1 }
 0x118   : > { %v2079_v50 = vpop.f32.mrf.mxu0 }
 0x119   : > { %v1386_v52 = vadd.f32 %v1385_v48, %v948_v45  ;;  %v1646_v55 = vadd.f32 %v1645_v47, %v1519_v46  ;;  %v1523_v4 = vmul.f32 %v2079_v50, %v2079_v50 }
 0x11a   : > { %v951_v56 = vpop.f32.mrf.mxu0 }
 0x11b   : > { %v1647_v57 = vadd.f32 %v1646_v55, %v1520_v53  ;;  %v1387_v58 = vadd.f32 %v1386_v52, %v951_v56  ;;  %v1521_v60 = vmul.f32 %v951_v56, %v951_v56  ;;  %v2605_v56 = vpop.f32.mrf.mxu1 }
 0x11c   : > { %v2082_v61 = vpop.f32.mrf.mxu0 }
 0x11d   : > { %v1388_v1 = vadd.f32 %v2078_v39, %v1387_v58  ;;  %v1648_v2 = vadd.f32 %v1647_v57, %v1521_v60  ;;  %v1526_v22 = vmul.f32 %v2082_v61, %v2082_v61 }
 0x11e   : > { %v964_v3 = vpop.f32.mrf.mxu0 }
 0x11f   : > { %v1649_v6 = vadd.f32 %v1648_v2, %v1522_v63  ;;  %v1389_v7 = vadd.f32 %v2079_v50, %v1388_v1  ;;  %v1524_v12 = vmul.f32 %v964_v3, %v964_v3 }
 0x120   : > { %v2083_v8 = vpop.f32.mrf.mxu0 }
 0x121   : > { %v1390_v11 = vadd.f32 %v1389_v7, %v964_v3  ;;  %v1650_v13 = vadd.f32 %v1649_v6, %v1523_v4  ;;  %v1527_v27 = vmul.f32 %v2083_v8, %v2083_v8  ;;  %v2607_v4 = vpop.f32.mrf.mxu1 }
 0x122   : > { %v967_v14 = vpop.f32.mrf.mxu0 }
 0x123   : > { %v1651_v16 = vadd.f32 %v1650_v13, %v1524_v12  ;;  %v1391_v17 = vadd.f32 %v1390_v11, %v967_v14  ;;  %v1525_v18 = vmul.f32 %v967_v14, %v967_v14 }
 0x124   : > { %v2086_v19 = vpop.f32.mrf.mxu0 }
 0x125   : > { %v1392_v23 = vadd.f32 %v2082_v61, %v1391_v17  ;;  %v1652_v24 = vadd.f32 %v1651_v16, %v1525_v18  ;;  %v1530_v45 = vmul.f32 %v2086_v19, %v2086_v19  ;;  %v2609_v17 = vpop.f32.mrf.mxu1 }
 0x126   : > { %v980_v26 = vpop.f32.mrf.mxu0 }
 0x127   : > { %v1653_v28 = vadd.f32 %v1652_v24, %v1526_v22  ;;  %v1393_v29 = vadd.f32 %v2083_v8, %v1392_v23  ;;  %v1528_v34 = vmul.f32 %v980_v26, %v980_v26 }
 0x128   : > { %v2087_v31 = vpop.f32.mrf.mxu0 }
 0x129   : > { %v1394_v33 = vadd.f32 %v1393_v29, %v980_v26  ;;  %v1654_v36 = vadd.f32 %v1653_v28, %v1527_v27  ;;  %v1531_v50 = vmul.f32 %v2087_v31, %v2087_v31  ;;  %v2611_v29 = vpop.f32.mrf.mxu1 }
 0x12a   : > { %v983_v37 = vpop.f32.mrf.mxu0 }
 0x12b   : > { %v1655_v38 = vadd.f32 %v1654_v36, %v1528_v34  ;;  %v1395_v39 = vadd.f32 %v1394_v33, %v983_v37  ;;  %v1529_v41 = vmul.f32 %v983_v37, %v983_v37 }
 0x12c   : > { %v2090_v42 = vpop.f32.mrf.mxu0 }
 0x12d   : > { %v1396_v46 = vadd.f32 %v2086_v19, %v1395_v39  ;;  %v1656_v47 = vadd.f32 %v1655_v38, %v1529_v41  ;;  %v1534_v6 = vmul.f32 %v2090_v42, %v2090_v42 }
 0x12e   : > { %v996_v48 = vpop.f32.mrf.mxu0 }
 0x12f   : > { %v1657_v52 = vadd.f32 %v1656_v47, %v1530_v45  ;;  %v1397_v53 = vadd.f32 %v2087_v31, %v1396_v46  ;;  %v1532_v58 = vmul.f32 %v996_v48, %v996_v48 }
 0x130   : > { %v2091_v55 = vpop.f32.mrf.mxu0 }
 0x131   : > { %v1398_v57 = vadd.f32 %v1397_v53, %v996_v48  ;;  %v1658_v60 = vadd.f32 %v1657_v52, %v1531_v50  ;;  %v1535_v12 = vmul.f32 %v2091_v55, %v2091_v55 }
 0x132   : > { %v999_v61 = vpop.f32.mrf.mxu0 }
 0x133   : > { %v1659_v63 = vadd.f32 %v1658_v60, %v1532_v58  ;;  %v1399_v1 = vadd.f32 %v1398_v57, %v999_v61  ;;  %v1533_v2 = vmul.f32 %v999_v61, %v999_v61 }
 0x134   : > { %v2094_v3 = vpop.f32.mrf.mxu0 }
 0x135   : > { %v1400_v7 = vadd.f32 %v2090_v42, %v1399_v1  ;;  %v1660_v8 = vadd.f32 %v1659_v63, %v1533_v2  ;;  %v1538_v31 = vmul.f32 %v2094_v3, %v2094_v3  ;;  %v2613_v42 = vpop.f32.mrf.mxu1 }
 0x136   : > { %v1012_v11 = vpop.f32.mrf.mxu0 }
 0x137   : > { %v1661_v13 = vadd.f32 %v1660_v8, %v1534_v6  ;;  %v1401_v14 = vadd.f32 %v2091_v55, %v1400_v7  ;;  %v1536_v19 = vmul.f32 %v1012_v11, %v1012_v11  ;;  %v2615_v57 = vpop.f32.mrf.mxu1 }
 0x138   : > { %v2095_v16 = vpop.f32.mrf.mxu0 }
 0x139   : > { %v1402_v18 = vadd.f32 %v1401_v14, %v1012_v11  ;;  %v1662_v22 = vadd.f32 %v1661_v13, %v1535_v12  ;;  %v1539_v37 = vmul.f32 %v2095_v16, %v2095_v16  ;;  %v2617_v7 = vpop.f32.mrf.mxu1 }
 0x13a   : > { %v1015_v23 = vpop.f32.mrf.mxu0 }
 0x13b   : > { %v1663_v24 = vadd.f32 %v1662_v22, %v1536_v19  ;;  %v1403_v26 = vadd.f32 %v1402_v18, %v1015_v23  ;;  %v1537_v27 = vmul.f32 %v1015_v23, %v1015_v23  ;;  %v2619_v22 = vpop.f32.mrf.mxu1 }
 0x13c   : > { %v2098_v28 = vpop.f32.mrf.mxu0 }
 0x13d   : > { %v1404_v33 = vadd.f32 %v2094_v3, %v1403_v26  ;;  %v1664_v34 = vadd.f32 %v1663_v24, %v1537_v27  ;;  %v1542_v58 = vmul.f32 %v2098_v28, %v2098_v28 }
 0x13e   : > { %v1028_v36 = vpop.f32.mrf.mxu0 }
 0x13f   : > { %v1665_v38 = vadd.f32 %v1664_v34, %v1538_v31  ;;  %v1405_v39 = vadd.f32 %v2095_v16, %v1404_v33  ;;  %v1540_v46 = vmul.f32 %v1028_v36, %v1028_v36 }
 0x140   : > { %v2099_v41 = vpop.f32.mrf.mxu0 }
 0x141   : > { %v1406_v45 = vadd.f32 %v1405_v39, %v1028_v36  ;;  %v1666_v47 = vadd.f32 %v1665_v38, %v1539_v37  ;;  %v1543_v1 = vmul.f32 %v2099_v41, %v2099_v41  ;;  %v2621_v36 = vpop.f32.mrf.mxu1 }
 0x142   : > { %v1031_v48 = vpop.f32.mrf.mxu0 }
 0x143   : > { %v1667_v50 = vadd.f32 %v1666_v47, %v1540_v46  ;;  %v1407_v52 = vadd.f32 %v1406_v45, %v1031_v48  ;;  %v1541_v53 = vmul.f32 %v1031_v48, %v1031_v48 }
 0x144   : > { %v2102_v55 = vpop.f32.mrf.mxu0 }
 0x145   : > { %v1408_v60 = vadd.f32 %v2098_v28, %v1407_v52  ;;  %v1668_v61 = vadd.f32 %v1667_v50, %v1541_v53  ;;  %v1546_v23 = vmul.f32 %v2102_v55, %v2102_v55  ;;  %v2623_v50 = vpop.f32.mrf.mxu1 }
 0x146   : > { %v1044_v63 = vpop.f32.mrf.mxu0 }
 0x147   : > { %v1669_v2 = vadd.f32 %v1668_v61, %v1542_v58  ;;  %v1409_v3 = vadd.f32 %v2099_v41, %v1408_v60  ;;  %v1544_v11 = vmul.f32 %v1044_v63, %v1044_v63 }
 0x148   : > { %v2103_v6 = vpop.f32.mrf.mxu0 }
 0x149   : > { %v1410_v8 = vadd.f32 %v1409_v3, %v1044_v63  ;;  %v1670_v12 = vadd.f32 %v1669_v2, %v1543_v1  ;;  %v1547_v28 = vmul.f32 %v2103_v6, %v2103_v6  ;;  %v2625_v2 = vpop.f32.mrf.mxu1 }
 0x14a   : > { %v1047_v13 = vpop.f32.mrf.mxu0 }
 0x14b   : > { %v1671_v14 = vadd.f32 %v1670_v12, %v1544_v11  ;;  %v1411_v16 = vadd.f32 %v1410_v8, %v1047_v13  ;;  %v1545_v18 = vmul.f32 %v1047_v13, %v1047_v13 }
 0x14c   : > { %v2106_v19 = vpop.f32.mrf.mxu0 }
 0x14d   : > { %v1412_v24 = vadd.f32 %v2102_v55, %v1411_v16  ;;  %v1672_v26 = vadd.f32 %v1671_v14, %v1545_v18  ;;  %v1550_v52 = vmul.f32 %v2106_v19, %v2106_v19  ;;  %v2627_v18 = vpop.f32.mrf.mxu1 }
 0x14e   : > { %v1060_v27 = vpop.f32.mrf.mxu0 }
 0x14f   : > { %v1673_v31 = vadd.f32 %v1672_v26, %v1546_v23  ;;  %v1413_v33 = vadd.f32 %v2103_v6, %v1412_v24  ;;  %v1548_v38 = vmul.f32 %v1060_v27, %v1060_v27 }
 0x150   : > { %v2107_v34 = vpop.f32.mrf.mxu0 }
 0x151   : > { %v1414_v37 = vadd.f32 %v1413_v33, %v1060_v27  ;;  %v1674_v39 = vadd.f32 %v1673_v31, %v1547_v28  ;;  %v1551_v60 = vmul.f32 %v2107_v34, %v2107_v34 }
 0x152   : > { %v1063_v41 = vpop.f32.mrf.mxu0 }
 0x153   : > { %v1675_v45 = vadd.f32 %v1674_v39, %v1548_v38  ;;  %v1415_v46 = vadd.f32 %v1414_v37, %v1063_v41  ;;  %v1549_v47 = vmul.f32 %v1063_v41, %v1063_v41 }
 0x154   : > { %v2110_v48 = vpop.f32.mrf.mxu0 }
 0x155   : > { %v1416_v53 = vadd.f32 %v2106_v19, %v1415_v46  ;;  %v1676_v55 = vadd.f32 %v1675_v45, %v1549_v47  ;;  %v1554_v23 = vmul.f32 %v2110_v48, %v2110_v48 }
 0x156   : > { %v1076_v58 = vpop.f32.mrf.mxu0 }
 0x157   : > { %v1677_v61 = vadd.f32 %v1676_v55, %v1550_v52  ;;  %v1417_v63 = vadd.f32 %v2107_v34, %v1416_v53  ;;  %v1552_v6 = vmul.f32 %v1076_v58, %v1076_v58  ;;  %v2629_v34 = vpop.f32.mrf.mxu1 }
 0x158   : > { %v2111_v1 = vpop.f32.mrf.mxu0 }
 0x159   : > { %v1418_v3 = vadd.f32 %v1417_v63, %v1076_v58  ;;  %v1678_v8 = vadd.f32 %v1677_v61, %v1551_v60  ;;  %v1555_v27 = vmul.f32 %v2111_v1, %v2111_v1  ;;  %v2631_v52 = vpop.f32.mrf.mxu1 }
 0x15a   : > { %v1079_v11 = vpop.f32.mrf.mxu0 }
 0x15b   : > { %v1679_v12 = vadd.f32 %v1678_v8, %v1552_v6  ;;  %v1419_v13 = vadd.f32 %v1418_v3, %v1079_v11  ;;  %v1553_v14 = vmul.f32 %v1079_v11, %v1079_v11  ;;  %v2633_v63 = vpop.f32.mrf.mxu1 }
 0x15c   : > { %v2114_v16 = vpop.f32.mrf.mxu0 }
 0x15d   : > { %v1420_v19 = vadd.f32 %v2110_v48, %v1419_v13  ;;  %v1680_v24 = vadd.f32 %v1679_v12, %v1553_v14  ;;  %v1558_v53 = vmul.f32 %v2114_v16, %v2114_v16  ;;  %v1561_v12 = vmul.f32 %v2573_v59, %v2573_v59  ;;  %v2641_v13 = vpop.f32.mrf.mxu1 }
 0x15e   : > { %v1092_v26 = vpop.f32.mrf.mxu0  ;;  %v1562_v14 = vmul.f32 %v2567_v44, %v2567_v44 }
 0x15f   : > { %v1681_v28 = vadd.f32 %v1680_v24, %v1554_v23  ;;  %v1421_v31 = vadd.f32 %v2111_v1, %v1420_v19  ;;  %v1556_v38 = vmul.f32 %v1092_v26, %v1092_v26  ;;  %v1560_v1 = vmul.f32 %v2569_v49, %v2569_v49 }
 0x160   : > { %v2115_v33 = vpop.f32.mrf.mxu0  ;;  %v1563_v19 = vmul.f32 %v2571_v54, %v2571_v54 }
 0x161   : > { %v1422_v37 = vadd.f32 %v1421_v31, %v1092_v26  ;;  %v1682_v39 = vadd.f32 %v1681_v28, %v1555_v27  ;;  %v1559_v58 = vmul.f32 %v2115_v33, %v2115_v33  ;;  %v2649_v26 = vpop.f32.mrf.mxu1 }
 0x162   : > { %v1095_v41 = vpop.f32.mrf.mxu0 }
 0x163   : > { %v1683_v45 = vadd.f32 %v1682_v39, %v1556_v38  ;;  %v1423_v46 = vadd.f32 %v1422_v37, %v1095_v41  ;;  %v1557_v47 = vmul.f32 %v1095_v41, %v1095_v41  ;;  %v2657_v37 = vpop.f32.mrf.mxu1  ;;  %v1566_v38 = vmul.f32 %v2575_v0, %v2575_v0 }
 0x164   : > { %v1567_v41 = vmul.f32 %v2579_v10, %v2579_v10 }
 0x165   : > { %v1424_v55 = vadd.f32 %v2114_v16, %v1423_v46  ;;  %v1684_v48 = vadd.f32 %v1683_v45, %v1557_v47  ;;  %v2665_v46 = vpop.f32.mrf.mxu1 }
 0x167   : > { %v1425_v60 = vadd.f32 %v2115_v33, %v1424_v55  ;;  %v1685_v61 = vadd.f32 %v1684_v48, %v1558_v53 }
 0x169   : > { %v1426_v3 = vadd.f32 %v1425_v60, %v2569_v49  ;;  %v1686_v6 = vadd.f32 %v1685_v61, %v1559_v58  ;;  %v2673_v58 = vpop.f32.mrf.mxu1  ;;  %v1570_v60 = vmul.f32 %v2583_v20, %v2583_v20 }
 0x16b   : > { %v1687_v8 = vadd.f32 %v1686_v6, %v1560_v1  ;;  %v1427_v11 = vadd.f32 %v1426_v3, %v2573_v59  ;;  %v1564_v59 = vmul.f32 %v2577_v5, %v2577_v5  ;;  %v1571_v1 = vmul.f32 %v2587_v30, %v2587_v30  ;;  %v2681_v6 = vpop.f32.mrf.mxu1 }
 0x16d   : > { %v1428_v16 = vadd.f32 %v2567_v44, %v1427_v11  ;;  %v1688_v23 = vadd.f32 %v1687_v8, %v1561_v12  ;;  %v1565_v44 = vmul.f32 %v2581_v15, %v2581_v15 }
 0x16f   : > { %v1689_v24 = vadd.f32 %v1688_v23, %v1562_v14  ;;  %v1429_v49 = vadd.f32 %v2571_v54, %v1428_v16  ;;  %v2689_v16 = vpop.f32.mrf.mxu1  ;;  %v1574_v23 = vmul.f32 %v2591_v40, %v2591_v40 }
 0x171   : > { %v1430_v27 = vadd.f32 %v1429_v49, %v2577_v5  ;;  %v1690_v28 = vadd.f32 %v1689_v24, %v1563_v19  ;;  %v1575_v24 = vmul.f32 %v2595_v62, %v2595_v62 }
 0x173   : > { %v1691_v31 = vadd.f32 %v1690_v28, %v1564_v59  ;;  %v1431_v33 = vadd.f32 %v1430_v27, %v2581_v15  ;;  %v1568_v15 = vmul.f32 %v2585_v25, %v2585_v25  ;;  %v2697_v27 = vpop.f32.mrf.mxu1 }
 0x175   : > { %v1432_v54 = vadd.f32 %v2575_v0, %v1431_v33  ;;  %v1692_v39 = vadd.f32 %v1691_v31, %v1565_v44  ;;  %v1569_v0 = vmul.f32 %v2589_v35, %v2589_v35  ;;  %v2705_v44 = vpop.f32.mrf.mxu1 }
 0x177   : > { %v1693_v45 = vadd.f32 %v1692_v39, %v1566_v38  ;;  %v1433_v5 = vadd.f32 %v2579_v10, %v1432_v54  ;;  %v1578_v38 = vmul.f32 %v2599_v21, %v2599_v21  ;;  %v1579_v39 = vmul.f32 %v2603_v43, %v2603_v43 }
 0x179   : > { %v1434_v47 = vadd.f32 %v1433_v5, %v2585_v25  ;;  %v1694_v53 = vadd.f32 %v1693_v45, %v1567_v41  ;;  %v2713_v45 = vpop.f32.mrf.mxu1 }
 0x17b   : > { %v1695_v55 = vadd.f32 %v1694_v53, %v1568_v15  ;;  %v1435_v48 = vadd.f32 %v1434_v47, %v2589_v35  ;;  %v1572_v35 = vmul.f32 %v2593_v51, %v2593_v51 }
 0x17d   : > { %v1436_v10 = vadd.f32 %v2583_v20, %v1435_v48  ;;  %v1696_v61 = vadd.f32 %v1695_v55, %v1569_v0  ;;  %v1573_v20 = vmul.f32 %v2597_v9, %v2597_v9  ;;  %v2721_v55 = vpop.f32.mrf.mxu1  ;;  %v1582_v48 = vmul.f32 %v2607_v4, %v2607_v4 }
 0x17f   : > { %v1697_v3 = vadd.f32 %v1696_v61, %v1570_v60  ;;  %v1437_v25 = vadd.f32 %v2587_v30, %v1436_v10  ;;  %v1583_v60 = vmul.f32 %v2611_v29, %v2611_v29  ;;  %v2729_v61 = vpop.f32.mrf.mxu1 }
 0x181   : > { %v1438_v8 = vadd.f32 %v1437_v25, %v2593_v51  ;;  %v1698_v11 = vadd.f32 %v1697_v3, %v1571_v1 }
 0x183   : > { %v1699_v12 = vadd.f32 %v1698_v11, %v1572_v35  ;;  %v1439_v14 = vadd.f32 %v1438_v8, %v2597_v9  ;;  %v1576_v9 = vmul.f32 %v2601_v32, %v2601_v32  ;;  %v2737_v35 = vpop.f32.mrf.mxu1  ;;  %v1586_v11 = vmul.f32 %v2615_v57, %v2615_v57 }
 0x185   : > { %v1440_v30 = vadd.f32 %v2591_v40, %v1439_v14  ;;  %v1700_v19 = vadd.f32 %v1699_v12, %v1573_v20  ;;  %v1577_v40 = vmul.f32 %v2605_v56, %v2605_v56  ;;  %v1587_v14 = vmul.f32 %v2619_v22, %v2619_v22 }
 0x187   : > { %v1701_v49 = vadd.f32 %v1700_v19, %v1574_v23  ;;  %v1441_v51 = vadd.f32 %v2595_v62, %v1440_v30  ;;  %v1287_v23 = vpop.f32.mrf.mxu1 }
 0x189   : > { %v1442_v59 = vadd.f32 %v1441_v51, %v2601_v32  ;;  %v1702_v28 = vadd.f32 %v1701_v49, %v1575_v24  ;;  %v2751_v51 = vpop.f32.mrf.mxu1 }
 0x18b   : > { %v1703_v31 = vadd.f32 %v1702_v28, %v1576_v9  ;;  %v1443_v33 = vadd.f32 %v1442_v59, %v2605_v56  ;;  %v1580_v56 = vmul.f32 %v2609_v17, %v2609_v17  ;;  %v1590_v59 = vmul.f32 %v2623_v50, %v2623_v50 }
 0x18c   : > { %v1591_v28 = vmul.f32 %v2627_v18, %v2627_v18 }
 0x18d   : > { %v1444_v62 = vadd.f32 %v2599_v21, %v1443_v33  ;;  %v1704_v54 = vadd.f32 %v1703_v31, %v1577_v40  ;;  %v1581_v21 = vmul.f32 %v2613_v42, %v2613_v42  ;;  %v1300_v33 = vpop.f32.mrf.mxu1 }
 0x18f   : > { %v1705_v41 = vadd.f32 %v1704_v54, %v1578_v38  ;;  %v1445_v32 = vadd.f32 %v2603_v43, %v1444_v62 }
 0x191   : > { %v1446_v5 = vadd.f32 %v1445_v32, %v2609_v17  ;;  %v1706_v47 = vadd.f32 %v1705_v41, %v1579_v39  ;;  %v2167_v39 = vpop.f32.mrf.mxu1  ;;  %v1594_v41 = vmul.f32 %v2631_v52, %v2631_v52 }
 0x193   : > { %v1707_v15 = vadd.f32 %v1706_v47, %v1580_v56  ;;  %v1447_v53 = vadd.f32 %v1446_v5, %v2613_v42  ;;  %v1584_v42 = vmul.f32 %v2617_v7, %v2617_v7  ;;  %v1595_v5 = vmul.f32 %v2641_v13, %v2641_v13  ;;  %v1303_v47 = vpop.f32.mrf.mxu1 }
 0x195   : > { %v1448_v43 = vadd.f32 %v2607_v4, %v1447_v53  ;;  %v1708_v0 = vadd.f32 %v1707_v15, %v1581_v21  ;;  %v1585_v4 = vmul.f32 %v2621_v36, %v2621_v36  ;;  %v1596_v53 = vmul.f32 %v2665_v46, %v2665_v46 }
 0x197   : > { %v1709_v10 = vadd.f32 %v1708_v0, %v1582_v48  ;;  %v1449_v17 = vadd.f32 %v2611_v29, %v1448_v43  ;;  %v2170_v43 = vpop.f32.mrf.mxu1  ;;  %v1598_v0 = vmul.f32 %v2657_v37, %v2657_v37 }
 0x199   : > { %v1450_v1 = vadd.f32 %v1449_v17, %v2617_v7  ;;  %v1710_v3 = vadd.f32 %v1709_v10, %v1583_v60  ;;  %v1599_v10 = vmul.f32 %v2673_v58, %v2673_v58 }
 0x19b   : > { %v1711_v25 = vadd.f32 %v1710_v3, %v1584_v42  ;;  %v1451_v8 = vadd.f32 %v1450_v1, %v2621_v36  ;;  %v1588_v36 = vmul.f32 %v2625_v2, %v2625_v2  ;;  %v1316_v1 = vpop.f32.mrf.mxu1  ;;  %v1600_v3 = vmul.f32 %v2697_v27, %v2697_v27 }
 0x19d   : > { %v1452_v29 = vadd.f32 %v2615_v57, %v1451_v8  ;;  %v1712_v12 = vadd.f32 %v1711_v25, %v1585_v4  ;;  %v1589_v57 = vmul.f32 %v2629_v34, %v2629_v34  ;;  %v2171_v4 = vpop.f32.mrf.mxu1 }
 0x19f   : > { %v1713_v20 = vadd.f32 %v1712_v12, %v1586_v11  ;;  %v1453_v7 = vadd.f32 %v2619_v22, %v1452_v29  ;;  %v1602_v11 = vmul.f32 %v2689_v16, %v2689_v16  ;;  %v1603_v12 = vmul.f32 %v2705_v44, %v2705_v44 }
 0x1a1   : > { %v1454_v30 = vadd.f32 %v1453_v7, %v2625_v2  ;;  %v1714_v19 = vadd.f32 %v1713_v20, %v1587_v14  ;;  %v1319_v20 = vpop.f32.mrf.mxu1 }
 0x1a3   : > { %v1715_v24 = vadd.f32 %v1714_v19, %v1588_v36  ;;  %v1455_v49 = vadd.f32 %v1454_v30, %v2629_v34  ;;  %v1592_v34 = vmul.f32 %v2633_v63, %v2633_v63  ;;  %v1604_v30 = vmul.f32 %v2729_v61, %v2729_v61 }
 0x1a5   : > { %v1456_v22 = vadd.f32 %v2623_v50, %v1455_v49  ;;  %v1716_v9 = vadd.f32 %v1715_v24, %v1589_v57  ;;  %v1593_v50 = vmul.f32 %v2649_v26, %v2649_v26  ;;  %v1605_v24 = vmul.f32 %v1287_v23, %v1287_v23  ;;  %v2174_v49 = vpop.f32.mrf.mxu1 }
 0x1a7   : > { %v1717_v31 = vadd.f32 %v1716_v9, %v1590_v59  ;;  %v1457_v2 = vadd.f32 %v2627_v18, %v1456_v22 }
 0x1a9   : > { %v1458_v40 = vadd.f32 %v1457_v2, %v2633_v63  ;;  %v1718_v38 = vadd.f32 %v1717_v31, %v1591_v28  ;;  %v1332_v28 = vpop.f32.mrf.mxu1 }
 0x1ab   : > { %v1719_v62 = vadd.f32 %v1718_v38, %v1592_v34  ;;  %v1459_v54 = vadd.f32 %v1458_v40, %v2649_v26  ;;  %v2175_v38 = vpop.f32.mrf.mxu1 }
 0x1ad   : > { %v1460_v32 = vadd.f32 %v2631_v52, %v1459_v54  ;;  %v1720_v18 = vadd.f32 %v1719_v62, %v1593_v50  ;;  %v1597_v52 = vmul.f32 %v2681_v6, %v2681_v6  ;;  %v1610_v62 = vmul.f32 %v2751_v51, %v2751_v51 }
 0x1ae   : > { %v1611_v50 = vmul.f32 %v2167_v39, %v2167_v39 }
 0x1af   : > { %v1721_v56 = vadd.f32 %v1720_v18, %v1594_v41  ;;  %v1461_v63 = vadd.f32 %v2641_v13, %v1460_v32  ;;  %v1335_v18 = vpop.f32.mrf.mxu1 }
 0x1b1   : > { %v1462_v15 = vadd.f32 %v1461_v63, %v2665_v46  ;;  %v1722_v26 = vadd.f32 %v1721_v56, %v1595_v5 }
 0x1b3   : > { %v1723_v21 = vadd.f32 %v1722_v26, %v1596_v53  ;;  %v1463_v48 = vadd.f32 %v1462_v15, %v2681_v6  ;;  %v1613_v15 = vmul.f32 %v1319_v20, %v1319_v20  ;;  %v2178_v53 = vpop.f32.mrf.mxu1  ;;  %v1614_v26 = vmul.f32 %v2170_v43, %v2170_v43 }
 0x1b5   : > { %v1464_v60 = vadd.f32 %v2657_v37, %v1463_v48  ;;  %v1724_v13 = vadd.f32 %v1723_v21, %v1597_v52  ;;  %v1601_v37 = vmul.f32 %v2713_v45, %v2713_v45  ;;  %v1615_v48 = vmul.f32 %v2171_v4, %v2171_v4 }
 0x1b7   : > { %v1725_v17 = vadd.f32 %v1724_v13, %v1598_v0  ;;  %v1465_v46 = vadd.f32 %v2673_v58, %v1464_v60  ;;  %v1348_v60 = vpop.f32.mrf.mxu1  ;;  %v1616_v13 = vmul.f32 %v1332_v28, %v1332_v28 }
 0x1b9   : > { %v1466_v42 = vadd.f32 %v1465_v46, %v2697_v27  ;;  %v1726_v6 = vadd.f32 %v1725_v17, %v1599_v10  ;;  %v1617_v46 = vmul.f32 %v1335_v18, %v1335_v18 }
 0x1bb   : > { %v1727_v25 = vadd.f32 %v1726_v6, %v1600_v3  ;;  %v1467_v8 = vadd.f32 %v1466_v42, %v2713_v45  ;;  %v2179_v42 = vpop.f32.mrf.mxu1 }
 0x1bd   : > { %v1468_v29 = vadd.f32 %v2689_v16, %v1467_v8  ;;  %v1728_v58 = vadd.f32 %v1727_v25, %v1601_v37  ;;  %v1606_v16 = vmul.f32 %v2721_v55, %v2721_v55  ;;  %v1619_v25 = vmul.f32 %v2175_v38, %v2175_v38 }
 0x1bf   : > { %v1729_v14 = vadd.f32 %v1728_v58, %v1602_v11  ;;  %v1469_v27 = vadd.f32 %v2705_v44, %v1468_v29  ;;  %v1607_v44 = vmul.f32 %v2737_v35, %v2737_v35  ;;  %v1620_v29 = vmul.f32 %v1348_v60, %v1348_v60 }
 0x1c1   : > { %v1470_v7 = vadd.f32 %v1469_v27, %v2729_v61  ;;  %v1730_v45 = vadd.f32 %v1729_v14, %v1603_v12  ;;  %v1608_v61 = vmul.f32 %v1300_v33, %v1300_v33  ;;  %v1622_v27 = vmul.f32 %v2178_v53, %v2178_v53 }
 0x1c3   : > { %v1731_v36 = vadd.f32 %v1730_v45, %v1604_v30  ;;  %v1471_v19 = vadd.f32 %v1470_v7, %v1287_v23  ;;  %v1609_v23 = vmul.f32 %v1303_v47, %v1303_v47  ;;  %v1623_v30 = vmul.f32 %v2179_v42, %v2179_v42 }
 0x1c5   : > { %v1472_v57 = vadd.f32 %v2721_v55, %v1471_v19  ;;  %v1732_v59 = vadd.f32 %v1731_v36, %v1605_v24 }
 0x1c7   : > { %v1733_v22 = vadd.f32 %v1732_v59, %v1606_v16  ;;  %v1473_v9 = vadd.f32 %v2737_v35, %v1472_v57  ;;  %v1612_v35 = vmul.f32 %v1316_v1, %v1316_v1 }
 0x1c9   : > { %v1474_v31 = vadd.f32 %v1473_v9, %v1300_v33  ;;  %v1734_v2 = vadd.f32 %v1733_v22, %v1607_v44 }
 0x1cb   : > { %v1735_v40 = vadd.f32 %v1734_v2, %v1608_v61  ;;  %v1475_v34 = vadd.f32 %v1474_v31, %v1303_v47 }
 0x1cd   : > { %v1476_v55 = vadd.f32 %v2751_v51, %v1475_v34  ;;  %v1736_v54 = vadd.f32 %v1735_v40, %v1609_v23 }
 0x1cf   : > { %v1737_v41 = vadd.f32 %v1736_v54, %v1610_v62  ;;  %v1477_v32 = vadd.f32 %v2167_v39, %v1476_v55 }
 0x1d1   : > { %v1478_v5 = vadd.f32 %v1477_v32, %v1316_v1  ;;  %v1738_v56 = vadd.f32 %v1737_v41, %v1611_v50  ;;  %v1618_v1 = vmul.f32 %v2174_v49, %v2174_v49 }
 0x1d3   : > { %v1739_v63 = vadd.f32 %v1738_v56, %v1612_v35  ;;  %v1479_v33 = vadd.f32 %v1478_v5, %v1319_v20 }
 0x1d5   : > { %v1480_v47 = vadd.f32 %v2170_v43, %v1479_v33  ;;  %v1740_v21 = vadd.f32 %v1739_v63, %v1613_v15  ;;  %v1351_v43 = vpop.f32.mrf.mxu1 }
 0x1d6   : > { %v1621_v14 = vmul.f32 %v1351_v43, %v1351_v43 }
 0x1d7   : > { %v1741_v52 = vadd.f32 %v1740_v21, %v1614_v26  ;;  %v1481_v0 = vadd.f32 %v2171_v4, %v1480_v47 }
 0x1d9   : > { %v1482_v51 = vadd.f32 %v1481_v0, %v1332_v28  ;;  %v1742_v10 = vadd.f32 %v1741_v52, %v1615_v48 }
 0x1db   : > { %v1743_v17 = vadd.f32 %v1742_v10, %v1616_v13  ;;  %v1483_v39 = vadd.f32 %v1482_v51, %v1335_v18 }
 0x1dd   : > { %v1484_v3 = vadd.f32 %v2174_v49, %v1483_v39  ;;  %v1744_v6 = vadd.f32 %v1743_v17, %v1617_v46 }
 0x1df   : > { %v1745_v8 = vadd.f32 %v1744_v6, %v1618_v1  ;;  %v1485_v37 = vadd.f32 %v2175_v38, %v1484_v3 }
 0x1e1   : > { %v1486_v11 = vadd.f32 %v1485_v37, %v1348_v60  ;;  %v1746_v58 = vadd.f32 %v1745_v8, %v1619_v25 }
 0x1e3   : > { %v1747_v4 = vadd.f32 %v1746_v58, %v1620_v29  ;;  %v1487_v12 = vadd.f32 %v1486_v11, %v1351_v43 }
 0x1e5   : > { %v1488_v20 = vadd.f32 %v2178_v53, %v1487_v12  ;;  %v1748_v7 = vadd.f32 %v1747_v4, %v1621_v14 }
 0x1e7   : > { %v1489_v45 = vadd.f32 %v2179_v42, %v1488_v20  ;;  %v1749_v36 = vadd.f32 %v1748_v7, %v1622_v27 }
 0x1e9   : > { %v1490_v19 = vrot.slane %v1489_v45, 4  ;;  %v1750_v24 = vadd.f32 %v1749_v36, %v1623_v30 }
 0x1eb   : > { %v1491_v49 = vadd.f32 %v1490_v19, %v1489_v45  ;;  %v1751_v16 = vrot.slane %v1750_v24, 4 }
 0x1ed   : > { %v1492_v57 = vrot.slane %v1491_v49, 2  ;;  %v1752_v59 = vadd.f32 %v1751_v16, %v1750_v24 }
 0x1ef   : > { %v1493_v44 = vadd.f32 %v1492_v57, %v1491_v49  ;;  %v1753_v22 = vrot.slane %v1752_v59, 2 }
 0x1f1   : > { %v1494_v9 = vrot.slane %v1493_v44, 1  ;;  %v1754_v28 = vadd.f32 %v1753_v22, %v1752_v59 }
 0x1f3   : > { %v1755_v31 = vrot.slane %v1754_v28, 1  ;;  %v1495_v61 = vadd.f32 %v1494_v9, %v1493_v44 }
 0x1f5   : > { %v1756_v2 = vadd.f32 %v1755_v31, %v1754_v28 }
 0x1f7   : > { %v1758_v40 = vsel %vm1757_vm1, %v1495_v61, %v1756_v2 }
 0x1f8   : > { %1759 = vst [vmem:[%s137_s14] sm:$0x3] %v1758_v40 }
 0x1f9   : > { %2308 = shalt.err (!%p2305_p3)
}
 0x1fa   : > { %s2309_s27 = scalar_lea.hbm %s2812_s22, 32  ;;  %s2313_s30 = scalar_lea.hbm %s2849_s2, 64 }
 0x1fb   : > { %p2310_p4 = scmp.ne.s32.totalorder %s2812_s22, %s2309_s27  ;;  %p2314_p9 = scmp.lt.s32.totalorder %s2812_s22, %s2849_s2 }
 0x1fc   : > { %p2315_p10 = scmp.lt.s32.totalorder %s2313_s30, %s2309_s27 }
 0x1fd   : > { %p2311_p7 = pnand %p2310_p4, %p2411_p5 }
 0x1fe   : > { %p2316_p11 = por %p2315_p10, %p2314_p9 }
 0x1ff   : > { %p2312_p8 = pneg %p2311_p7 }
 0x201   : > { %p2317_p12 = pnand %p2316_p11, %p2312_p8 }
 0x203   : > { %2320 = shalt.err (!%p2317_p12)
}
 0x204   : > { %2188 = dma.vmem_to_hbm [thread:$0]  (%p2411_p5), %s1775_s16, 32, %s2812_s22, %s1761_s23  }
 0x205 PF: > { %p2194_p13 = scmp.ge.s32.totalorder %s2355_s12, 2  ;;  %s1786_s5 = sand.u32 1, %s2343_s9  }
 0x206   : > { %s1787_s6 = scalar_lea.sflag [#allocation3], %s1786_s5 }
 0x207   : > { %p2191_p0 = pnand %p2194_p13, %p2415_p6 }
 0x209   : > { %p2192_p1 = pneg %p2191_p0 }
 0x20b   : > { %2338 = dma.done.wait (%p2192_p1), %s1787_s6, 32  }
 0x20c   : > { %2340 = vsyncadd (%p2192_p1), %s1787_s6, 4294967264  ;;  %p12_p2 = scmp.ge.s32.totalorder %s2398_s15, 4   ;;  %s2852_s9 = smov %s2347_s10 }
 0x20d   : > { %s2853_s10 = smov %s2351_s11  ;;  %s2854_s11 = smov %s2409_s18 }
 0x20e   : > { %s2855_s12 = smov %s2398_s15  ;;  %14 = sbr.rel (!%p12_p2) target bundleno = 3 (0x3), region = 63 }
 0x213   :  { %1792 = vsyncpa [#allocation3], 1 }
 0x214   :  { %1794 = vsyncpa [#allocation3 + $0x1], 1 }

</bundles_post_ra>
